<compile_context>
chip_gen: v5e
topology: v5e:2x2
jax: 0.10.0
libtpu: 0.0.40
codegen_flags: <defaults>
</compile_context>

<pallas_src>
import jax
import jax.numpy as jnp
import numpy as np
from jax.experimental import pallas as pl
from jax.experimental.pallas import tpu as pltpu  # noqa: F401  (TPU backend assumed)

# ---------------- model config (small, consistent with module __init__) -------
B = 4            # batch
T = 8            # max sequence length
INPUT_SIZE = 16
HIDDEN = 32
LABEL_NUM = 3
NUM_HEADS = 11   # fc_0 ... fc_10

H4 = 4 * HIDDEN                  # 128 (conveniently == lane width)
NL = NUM_HEADS * LABEL_NUM       # 33 fused head columns
LANES = H4                       # 128

# Packed-weight blob row offsets (all multiples of 8 -> tile-aligned slices).
ROW_WIH = 0                              # (INPUT_SIZE, 4H)
ROW_WHH = ROW_WIH + INPUT_SIZE           # (HIDDEN, 4H)
ROW_BL = ROW_WHH + HIDDEN                # (1, 4H) lstm bias (b_ih + b_hh)
ROW_WHEAD = ROW_BL + 8                   # (HIDDEN, 128) fused trunk+heads
ROW_BHEAD = ROW_WHEAD + HIDDEN           # (1, 128) fused bias
ROW_G = ROW_BHEAD + 8                    # (128, 128) block-diag group-sum matrix
BLOB_ROWS = ROW_G + LANES                # 224


# ------------------------------- Pallas kernel --------------------------------
def rnnmodel_kernel(x_ref, len_ref, w_ref, out_ref):
    """Length-masked LSTM recurrence (== pack_padded final hidden state) +
    fused linear trunk / 11 log_softmax heads, all in VMEM, one output store."""
    TB, I_ = x_ref.shape
    Bp = len_ref.shape[0]
    T_ = TB // Bp
    H_ = HIDDEN

    wih = w_ref[ROW_WIH:ROW_WIH + I_, :]          # (I, 4H)
    whh = w_ref[ROW_WHH:ROW_WHH + H_, :]          # (H, 4H)
    b_l = w_ref[ROW_BL:ROW_BL + 1, :]             # (1, 4H)
    w_hd = w_ref[ROW_WHEAD:ROW_WHEAD + H_, :]     # (H, 128) lanes >= 33 are zero
    b_hd = w_ref[ROW_BHEAD:ROW_BHEAD + 1, :]      # (1, 128)
    grp = w_ref[ROW_G:ROW_G + LANES, :]           # (128, 128) group-sum matrix

    lengths = len_ref[...]                        # (Bp, 1) int32

    # Hoisted input projection: all T timesteps in one MXU dot, bias folded in.
    xg = jnp.dot(x_ref[...], wih, preferred_element_type=jnp.float32) + b_l  # (T*Bp, 4H)

    h = jnp.zeros((Bp, H_), jnp.float32)
    c = jnp.zeros((Bp, H_), jnp.float32)

    # Statically unrolled recurrence (T is small & static): each xg slice is one
    # tile-aligned (8,128) vreg; per step a single (Bp,H)x(H,4H) dot remains on
    # the serial critical path.
    for t in range(T_):
        gates = xg[t * Bp:(t + 1) * Bp, :] + jnp.dot(
            h, whh, preferred_element_type=jnp.float32)      # (Bp, 4H), order i,f,g,o
        sig = jax.nn.sigmoid(gates)      # full-vreg EUP op
        tah = jnp.tanh(gates)            # full-vreg EUP op
        i_g = sig[:, 0 * H_:1 * H_]
        f_g = sig[:, 1 * H_:2 * H_]
        g_g = tah[:, 2 * H_:3 * H_]
        o_g = sig[:, 3 * H_:4 * H_]
        c_new = f_g * c + i_g * g_g
        h_new = o_g * jnp.tanh(c_new)
        # packed-sequence semantics: state frozen once t >= length[b]
        mask = lengths > t               # (Bp, 1) bool, no dep on h/c (hoistable)
        h = jnp.where(mask, h_new, h)
        c = jnp.where(mask, c_new, c)

    # Fused fc1..fc4 + 11 heads: one matmul, grouped log_softmax via block-diag
    # group-sum matmul (exact: the row stabilizer m cancels algebraically),
    # single lane-dense (Bp, 128) store.
    logits = jnp.dot(h, w_hd, preferred_element_type=jnp.float32) + b_hd   # (Bp, 128)
    m = jnp.max(logits, axis=-1, keepdims=True)                            # row stabilizer
    p = jnp.exp(logits - m)
    s = jnp.dot(p, grp, preferred_element_type=jnp.float32)                # per-group sums
    out_ref[...] = logits - m - jnp.log(s)


# --------------------------- wrapper-side param fusion -------------------------
def _group_sum_matrix():
    g = np.zeros((LANES, LANES), np.float32)
    for hd in range(NUM_HEADS):
        g[hd * LABEL_NUM:(hd + 1) * LABEL_NUM,
          hd * LABEL_NUM:(hd + 1) * LABEL_NUM] = 1.0
    for j in range(NL, LANES):           # identity on padded lanes -> finite output
        g[j, j] = 1.0
    return jnp.asarray(g)


def pack_params(p):
    """Fuse the linear trunk + 11 heads (exact: no nonlinearity between them)
    and pack everything into one lane-dense (224, 128) f32 blob (one DMA)."""
    wf_flat = jnp.transpose(p["wf"], (1, 0, 2)).reshape(16, NL)        # (16, 33)
    bf_flat = p["bf"].reshape(1, NL)                                   # (1, 33)
    w_comb = p["w1"] @ p["w2"] @ p["w3"] @ p["w4"] @ wf_flat           # (H, 33)
    b_comb = ((((p["b1"] @ p["w2"] + p["b2"]) @ p["w3"] + p["b3"])
               @ p["w4"] + p["b4"]) @ wf_flat + bf_flat)               # (1, 33)

    lane_pad = LANES - NL
    w_head = jnp.concatenate([w_comb, jnp.zeros((HIDDEN, lane_pad), jnp.float32)], axis=1)
    b_head = jnp.concatenate([b_comb, jnp.zeros((1, lane_pad), jnp.float32)], axis=1)
    z7 = jnp.zeros((7, LANES), jnp.float32)

    blob = jnp.concatenate([
        p["w_ih"],              # rows   0: 16
        p["w_hh"],              # rows  16: 48
        p["b_lstm"], z7,        # rows  48: 56
        w_head,                 # rows  56: 88
        b_head, z7,             # rows  88: 96
        _group_sum_matrix(),    # rows  96:224
    ], axis=0)
    assert blob.shape == (BLOB_ROWS, LANES)
    return blob


# ------------------------------- JAX wrapper -----------------------------------
def rnnmodel_forward(x, lengths, params):
    """x: (B, T, input_size) batch-first (PyTorch convention), lengths: (B,).
    Assumes 0 < lengths[b] <= T (pack_padded precondition)."""
    b, t, i = x.shape
    b_pad = max(8, -(-b // 8) * 8)                               # pad batch to sublane height
    x_tm = jnp.transpose(x, (1, 0, 2)).astype(jnp.float32)       # (T, B, I)
    x_tm = jnp.pad(x_tm, ((0, 0), (0, b_pad - b), (0, 0)))
    x2d = x_tm.reshape(t * b_pad, i)                             # time-major row blocks
    len2d = jnp.pad(lengths.astype(jnp.int32), (0, b_pad - b)).reshape(b_pad, 1)
    blob = pack_params(params)

    out = pl.pallas_call(
        rnnmodel_kernel,
        out_shape=jax.ShapeDtypeStruct((b_pad, LANES), jnp.float32),
    )(x2d, len2d, blob)
    # TODO(synk): for large batches add grid=(num_batch_tiles,) with BlockSpecs
    # on x2d/len2d/out and dimension_semantics=("parallel",) to pipeline DMA and
    # engage both v7x TensorCores; a single invocation is enough at this size.
    return out[:b, :NL].reshape(b, NUM_HEADS, LABEL_NUM)


# --------------------------- deterministic params -------------------------------
def init_params(key):
    ks = jax.random.split(key, 16)

    def u(k, shape, fan_in):
        bound = 1.0 / np.sqrt(fan_in)
        return jax.random.uniform(k, shape, jnp.float32, -bound, bound)

    params = {
        "w_ih": u(ks[0], (INPUT_SIZE, H4), HIDDEN),
        "w_hh": u(ks[1], (HIDDEN, H4), HIDDEN),
        "b_lstm": u(ks[2], (1, H4), HIDDEN) + u(ks[3], (1, H4), HIDDEN),
        "w1": u(ks[4], (HIDDEN, 128), HIDDEN), "b1": u(ks[5], (1, 128), HIDDEN),
        "w2": u(ks[6], (128, 64), 128),        "b2": u(ks[7], (1, 64), 128),
        "w3": u(ks[8], (64, 32), 64),          "b3": u(ks[9], (1, 32), 64),
        "w4": u(ks[10], (32, 16), 32),         "b4": u(ks[11], (1, 16), 32),
        "wf": u(ks[12], (NUM_HEADS, 16, LABEL_NUM), 16),
        "bf": u(ks[13], (NUM_HEADS, 1, LABEL_NUM), 16),
    }
    return params


# ------------------------------ pure-JAX reference ------------------------------
def reference_forward(x, lengths, p):
    b, t, _ = x.shape
    h = jnp.zeros((b, HIDDEN), jnp.float32)
    c = jnp.zeros((b, HIDDEN), jnp.float32)
    lengths2d = lengths.reshape(b, 1).astype(jnp.int32)
    for step in range(t):
        x_t = x[:, step, :]
        gates = x_t @ p["w_ih"] + h @ p["w_hh"] + p["b_lstm"]
        i_g = jax.nn.sigmoid(gates[:, 0:HIDDEN])
        f_g = jax.nn.sigmoid(gates[:, HIDDEN:2 * HIDDEN])
        g_g = jnp.tanh(gates[:, 2 * HIDDEN:3 * HIDDEN])
        o_g = jax.nn.sigmoid(gates[:, 3 * HIDDEN:4 * HIDDEN])
        c_new = f_g * c + i_g * g_g
        h_new = o_g * jnp.tanh(c_new)
        mask = step < lengths2d
        h = jnp.where(mask, h_new, h)
        c = jnp.where(mask, c_new, c)
    out = h @ p["w1"] + p["b1"]
    out = out @ p["w2"] + p["b2"]
    out = out @ p["w3"] + p["b3"]
    out = out @ p["w4"] + p["b4"]
    heads = []
    for hd in range(NUM_HEADS):
        logits = out @ p["wf"][hd] + p["bf"][hd]
        heads.append(jax.nn.log_softmax(logits, axis=1))
    return jnp.stack(heads, axis=1)


# ------------------------------------ main ---------------------------------------
if __name__ == "__main__":
    key = jax.random.PRNGKey(0)
    k_x, k_p = jax.random.split(key)

    x = jax.random.normal(k_x, (B, T, INPUT_SIZE), jnp.float32)
    lengths = jnp.array([8, 5, 8, 3], dtype=jnp.int32)          # max == T
    params = init_params(k_p)

    out = jax.block_until_ready(rnnmodel_forward(x, lengths, params))
    assert out.shape == (B, NUM_HEADS, LABEL_NUM), out.shape

    ref = jax.block_until_ready(reference_forward(x, lengths, params))
    np.testing.assert_allclose(np.asarray(out), np.asarray(ref), rtol=1e-4, atol=1e-4)

    print("KERNEL_OK")
</pallas_src>

<mosaic_0001>
module attributes {stable_mosaic.version = 11 : i64} {
  func.func @rnnmodel_kernel(%arg0: memref<64x16xf32, #tpu.memory_space<vmem>>, %arg1: memref<8x1xi32, #tpu.memory_space<vmem>>, %arg2: memref<224x128xf32, #tpu.memory_space<vmem>>, %arg3: memref<8x128xf32, #tpu.memory_space<vmem>>) attributes {dimension_semantics = [], scalar_prefetch = 0 : i64, scratch_operands = 0 : i64, tpu.core_type = #tpu.core_type<tc>} {
    %c0 = arith.constant 0 : index
    %c0_0 = arith.constant 0 : index
    %0 = vector.load %arg2[%c0, %c0_0] : memref<224x128xf32, #tpu.memory_space<vmem>>, vector<16x128xf32>
    %c16 = arith.constant 16 : index
    %c0_1 = arith.constant 0 : index
    %1 = vector.load %arg2[%c16, %c0_1] : memref<224x128xf32, #tpu.memory_space<vmem>>, vector<32x128xf32>
    %c48 = arith.constant 48 : index
    %c0_2 = arith.constant 0 : index
    %2 = vector.load %arg2[%c48, %c0_2] : memref<224x128xf32, #tpu.memory_space<vmem>>, vector<1x128xf32>
    %c56 = arith.constant 56 : index
    %c0_3 = arith.constant 0 : index
    %3 = vector.load %arg2[%c56, %c0_3] : memref<224x128xf32, #tpu.memory_space<vmem>>, vector<32x128xf32>
    %c88 = arith.constant 88 : index
    %c0_4 = arith.constant 0 : index
    %4 = vector.load %arg2[%c88, %c0_4] : memref<224x128xf32, #tpu.memory_space<vmem>>, vector<1x128xf32>
    %c96 = arith.constant 96 : index
    %c0_5 = arith.constant 0 : index
    %5 = vector.load %arg2[%c96, %c0_5] : memref<224x128xf32, #tpu.memory_space<vmem>>, vector<128x128xf32>
    %c0_6 = arith.constant 0 : index
    %c0_7 = arith.constant 0 : index
    %6 = vector.load %arg1[%c0_6, %c0_7] : memref<8x1xi32, #tpu.memory_space<vmem>>, vector<8x1xi32>
    %c0_8 = arith.constant 0 : index
    %c0_9 = arith.constant 0 : index
    %7 = vector.load %arg0[%c0_8, %c0_9] : memref<64x16xf32, #tpu.memory_space<vmem>>, vector<64x16xf32>
    %cst = arith.constant dense<0.000000e+00> : vector<64x128xf32>
    %8 = tpu.matmul %7, %0, %cst {dimension_numbers = #tpu.dot_dimension_numbers<[1], [0], [0], [1], [0, 0, 1, 1], [], []>} : vector<64x16xf32>, vector<16x128xf32>, vector<64x128xf32> -> vector<64x128xf32>
    %9 = vector.broadcast %2 : vector<1x128xf32> to vector<64x128xf32>
    %10 = arith.addf %8, %9 : vector<64x128xf32>
    %cst_10 = arith.constant 0.000000e+00 : f32
    %11 = vector.broadcast %cst_10 : f32 to vector<8x32xf32>
    %cst_11 = arith.constant 0.000000e+00 : f32
    %12 = vector.broadcast %cst_11 : f32 to vector<8x32xf32>
    %13 = vector.extract_strided_slice %10 {offsets = [0, 0], sizes = [8, 128], strides = [1, 1]} : vector<64x128xf32> to vector<8x128xf32>
    %cst_12 = arith.constant dense<0.000000e+00> : vector<8x128xf32>
    %14 = tpu.matmul %11, %1, %cst_12 {dimension_numbers = #tpu.dot_dimension_numbers<[1], [0], [0], [1], [0, 0, 1, 1], [], []>} : vector<8x32xf32>, vector<32x128xf32>, vector<8x128xf32> -> vector<8x128xf32>
    %15 = arith.addf %13, %14 : vector<8x128xf32>
    %16 = arith.negf %15 : vector<8x128xf32>
    %17 = math.exp %16 : vector<8x128xf32>
    %cst_13 = arith.constant 1.000000e+00 : f32
    %18 = vector.broadcast %cst_13 : f32 to vector<8x128xf32>
    %19 = arith.addf %18, %17 : vector<8x128xf32>
    %20 = arith.divf %18, %19 : vector<8x128xf32>
    %21 = math.tanh %15 : vector<8x128xf32>
    %22 = vector.extract_strided_slice %20 {offsets = [0, 0], sizes = [8, 32], strides = [1, 1]} : vector<8x128xf32> to vector<8x32xf32>
    %23 = vector.extract_strided_slice %20 {offsets = [0, 32], sizes = [8, 32], strides = [1, 1]} : vector<8x128xf32> to vector<8x32xf32>
    %24 = vector.extract_strided_slice %21 {offsets = [0, 64], sizes = [8, 32], strides = [1, 1]} : vector<8x128xf32> to vector<8x32xf32>
    %25 = vector.extract_strided_slice %20 {offsets = [0, 96], sizes = [8, 32], strides = [1, 1]} : vector<8x128xf32> to vector<8x32xf32>
    %26 = arith.mulf %23, %12 : vector<8x32xf32>
    %27 = arith.mulf %22, %24 : vector<8x32xf32>
    %28 = arith.addf %26, %27 : vector<8x32xf32>
    %29 = math.tanh %28 : vector<8x32xf32>
    %30 = arith.mulf %25, %29 : vector<8x32xf32>
    %c0_i32 = arith.constant 0 : i32
    %31 = vector.broadcast %c0_i32 : i32 to vector<8x1xi32>
    %32 = arith.cmpi sgt, %6, %31 : vector<8x1xi32>
    %33 = vector.shape_cast %32 : vector<8x1xi1> to vector<8x1xi1>
    %34 = vector.broadcast %33 : vector<8x1xi1> to vector<8x32xi1>
    %35 = arith.select %34, %30, %11 : vector<8x32xi1>, vector<8x32xf32>
    %36 = vector.shape_cast %32 : vector<8x1xi1> to vector<8x1xi1>
    %37 = vector.broadcast %36 : vector<8x1xi1> to vector<8x32xi1>
    %38 = arith.select %37, %28, %12 : vector<8x32xi1>, vector<8x32xf32>
    %39 = vector.extract_strided_slice %10 {offsets = [8, 0], sizes = [8, 128], strides = [1, 1]} : vector<64x128xf32> to vector<8x128xf32>
    %cst_14 = arith.constant dense<0.000000e+00> : vector<8x128xf32>
    %40 = tpu.matmul %35, %1, %cst_14 {dimension_numbers = #tpu.dot_dimension_numbers<[1], [0], [0], [1], [0, 0, 1, 1], [], []>} : vector<8x32xf32>, vector<32x128xf32>, vector<8x128xf32> -> vector<8x128xf32>
    %41 = arith.addf %39, %40 : vector<8x128xf32>
    %42 = arith.negf %41 : vector<8x128xf32>
    %43 = math.exp %42 : vector<8x128xf32>
    %cst_15 = arith.constant 1.000000e+00 : f32
    %44 = vector.broadcast %cst_15 : f32 to vector<8x128xf32>
    %45 = arith.addf %44, %43 : vector<8x128xf32>
    %46 = arith.divf %44, %45 : vector<8x128xf32>
    %47 = math.tanh %41 : vector<8x128xf32>
    %48 = vector.extract_strided_slice %46 {offsets = [0, 0], sizes = [8, 32], strides = [1, 1]} : vector<8x128xf32> to vector<8x32xf32>
    %49 = vector.extract_strided_slice %46 {offsets = [0, 32], sizes = [8, 32], strides = [1, 1]} : vector<8x128xf32> to vector<8x32xf32>
    %50 = vector.extract_strided_slice %47 {offsets = [0, 64], sizes = [8, 32], strides = [1, 1]} : vector<8x128xf32> to vector<8x32xf32>
    %51 = vector.extract_strided_slice %46 {offsets = [0, 96], sizes = [8, 32], strides = [1, 1]} : vector<8x128xf32> to vector<8x32xf32>
    %52 = arith.mulf %49, %38 : vector<8x32xf32>
    %53 = arith.mulf %48, %50 : vector<8x32xf32>
    %54 = arith.addf %52, %53 : vector<8x32xf32>
    %55 = math.tanh %54 : vector<8x32xf32>
    %56 = arith.mulf %51, %55 : vector<8x32xf32>
    %c1_i32 = arith.constant 1 : i32
    %57 = vector.broadcast %c1_i32 : i32 to vector<8x1xi32>
    %58 = arith.cmpi sgt, %6, %57 : vector<8x1xi32>
    %59 = vector.shape_cast %58 : vector<8x1xi1> to vector<8x1xi1>
    %60 = vector.broadcast %59 : vector<8x1xi1> to vector<8x32xi1>
    %61 = arith.select %60, %56, %35 : vector<8x32xi1>, vector<8x32xf32>
    %62 = vector.shape_cast %58 : vector<8x1xi1> to vector<8x1xi1>
    %63 = vector.broadcast %62 : vector<8x1xi1> to vector<8x32xi1>
    %64 = arith.select %63, %54, %38 : vector<8x32xi1>, vector<8x32xf32>
    %65 = vector.extract_strided_slice %10 {offsets = [16, 0], sizes = [8, 128], strides = [1, 1]} : vector<64x128xf32> to vector<8x128xf32>
    %cst_16 = arith.constant dense<0.000000e+00> : vector<8x128xf32>
    %66 = tpu.matmul %61, %1, %cst_16 {dimension_numbers = #tpu.dot_dimension_numbers<[1], [0], [0], [1], [0, 0, 1, 1], [], []>} : vector<8x32xf32>, vector<32x128xf32>, vector<8x128xf32> -> vector<8x128xf32>
    %67 = arith.addf %65, %66 : vector<8x128xf32>
    %68 = arith.negf %67 : vector<8x128xf32>
    %69 = math.exp %68 : vector<8x128xf32>
    %cst_17 = arith.constant 1.000000e+00 : f32
    %70 = vector.broadcast %cst_17 : f32 to vector<8x128xf32>
    %71 = arith.addf %70, %69 : vector<8x128xf32>
    %72 = arith.divf %70, %71 : vector<8x128xf32>
    %73 = math.tanh %67 : vector<8x128xf32>
    %74 = vector.extract_strided_slice %72 {offsets = [0, 0], sizes = [8, 32], strides = [1, 1]} : vector<8x128xf32> to vector<8x32xf32>
    %75 = vector.extract_strided_slice %72 {offsets = [0, 32], sizes = [8, 32], strides = [1, 1]} : vector<8x128xf32> to vector<8x32xf32>
    %76 = vector.extract_strided_slice %73 {offsets = [0, 64], sizes = [8, 32], strides = [1, 1]} : vector<8x128xf32> to vector<8x32xf32>
    %77 = vector.extract_strided_slice %72 {offsets = [0, 96], sizes = [8, 32], strides = [1, 1]} : vector<8x128xf32> to vector<8x32xf32>
    %78 = arith.mulf %75, %64 : vector<8x32xf32>
    %79 = arith.mulf %74, %76 : vector<8x32xf32>
    %80 = arith.addf %78, %79 : vector<8x32xf32>
    %81 = math.tanh %80 : vector<8x32xf32>
    %82 = arith.mulf %77, %81 : vector<8x32xf32>
    %c2_i32 = arith.constant 2 : i32
    %83 = vector.broadcast %c2_i32 : i32 to vector<8x1xi32>
    %84 = arith.cmpi sgt, %6, %83 : vector<8x1xi32>
    %85 = vector.shape_cast %84 : vector<8x1xi1> to vector<8x1xi1>
    %86 = vector.broadcast %85 : vector<8x1xi1> to vector<8x32xi1>
    %87 = arith.select %86, %82, %61 : vector<8x32xi1>, vector<8x32xf32>
    %88 = vector.shape_cast %84 : vector<8x1xi1> to vector<8x1xi1>
    %89 = vector.broadcast %88 : vector<8x1xi1> to vector<8x32xi1>
    %90 = arith.select %89, %80, %64 : vector<8x32xi1>, vector<8x32xf32>
    %91 = vector.extract_strided_slice %10 {offsets = [24, 0], sizes = [8, 128], strides = [1, 1]} : vector<64x128xf32> to vector<8x128xf32>
    %cst_18 = arith.constant dense<0.000000e+00> : vector<8x128xf32>
    %92 = tpu.matmul %87, %1, %cst_18 {dimension_numbers = #tpu.dot_dimension_numbers<[1], [0], [0], [1], [0, 0, 1, 1], [], []>} : vector<8x32xf32>, vector<32x128xf32>, vector<8x128xf32> -> vector<8x128xf32>
    %93 = arith.addf %91, %92 : vector<8x128xf32>
    %94 = arith.negf %93 : vector<8x128xf32>
    %95 = math.exp %94 : vector<8x128xf32>
    %cst_19 = arith.constant 1.000000e+00 : f32
    %96 = vector.broadcast %cst_19 : f32 to vector<8x128xf32>
    %97 = arith.addf %96, %95 : vector<8x128xf32>
    %98 = arith.divf %96, %97 : vector<8x128xf32>
    %99 = math.tanh %93 : vector<8x128xf32>
    %100 = vector.extract_strided_slice %98 {offsets = [0, 0], sizes = [8, 32], strides = [1, 1]} : vector<8x128xf32> to vector<8x32xf32>
    %101 = vector.extract_strided_slice %98 {offsets = [0, 32], sizes = [8, 32], strides = [1, 1]} : vector<8x128xf32> to vector<8x32xf32>
    %102 = vector.extract_strided_slice %99 {offsets = [0, 64], sizes = [8, 32], strides = [1, 1]} : vector<8x128xf32> to vector<8x32xf32>
    %103 = vector.extract_strided_slice %98 {offsets = [0, 96], sizes = [8, 32], strides = [1, 1]} : vector<8x128xf32> to vector<8x32xf32>
    %104 = arith.mulf %101, %90 : vector<8x32xf32>
    %105 = arith.mulf %100, %102 : vector<8x32xf32>
    %106 = arith.addf %104, %105 : vector<8x32xf32>
    %107 = math.tanh %106 : vector<8x32xf32>
    %108 = arith.mulf %103, %107 : vector<8x32xf32>
    %c3_i32 = arith.constant 3 : i32
    %109 = vector.broadcast %c3_i32 : i32 to vector<8x1xi32>
    %110 = arith.cmpi sgt, %6, %109 : vector<8x1xi32>
    %111 = vector.shape_cast %110 : vector<8x1xi1> to vector<8x1xi1>
    %112 = vector.broadcast %111 : vector<8x1xi1> to vector<8x32xi1>
    %113 = arith.select %112, %108, %87 : vector<8x32xi1>, vector<8x32xf32>
    %114 = vector.shape_cast %110 : vector<8x1xi1> to vector<8x1xi1>
    %115 = vector.broadcast %114 : vector<8x1xi1> to vector<8x32xi1>
    %116 = arith.select %115, %106, %90 : vector<8x32xi1>, vector<8x32xf32>
    %117 = vector.extract_strided_slice %10 {offsets = [32, 0], sizes = [8, 128], strides = [1, 1]} : vector<64x128xf32> to vector<8x128xf32>
    %cst_20 = arith.constant dense<0.000000e+00> : vector<8x128xf32>
    %118 = tpu.matmul %113, %1, %cst_20 {dimension_numbers = #tpu.dot_dimension_numbers<[1], [0], [0], [1], [0, 0, 1, 1], [], []>} : vector<8x32xf32>, vector<32x128xf32>, vector<8x128xf32> -> vector<8x128xf32>
    %119 = arith.addf %117, %118 : vector<8x128xf32>
    %120 = arith.negf %119 : vector<8x128xf32>
    %121 = math.exp %120 : vector<8x128xf32>
    %cst_21 = arith.constant 1.000000e+00 : f32
    %122 = vector.broadcast %cst_21 : f32 to vector<8x128xf32>
    %123 = arith.addf %122, %121 : vector<8x128xf32>
    %124 = arith.divf %122, %123 : vector<8x128xf32>
    %125 = math.tanh %119 : vector<8x128xf32>
    %126 = vector.extract_strided_slice %124 {offsets = [0, 0], sizes = [8, 32], strides = [1, 1]} : vector<8x128xf32> to vector<8x32xf32>
    %127 = vector.extract_strided_slice %124 {offsets = [0, 32], sizes = [8, 32], strides = [1, 1]} : vector<8x128xf32> to vector<8x32xf32>
    %128 = vector.extract_strided_slice %125 {offsets = [0, 64], sizes = [8, 32], strides = [1, 1]} : vector<8x128xf32> to vector<8x32xf32>
    %129 = vector.extract_strided_slice %124 {offsets = [0, 96], sizes = [8, 32], strides = [1, 1]} : vector<8x128xf32> to vector<8x32xf32>
    %130 = arith.mulf %127, %116 : vector<8x32xf32>
    %131 = arith.mulf %126, %128 : vector<8x32xf32>
    %132 = arith.addf %130, %131 : vector<8x32xf32>
    %133 = math.tanh %132 : vector<8x32xf32>
    %134 = arith.mulf %129, %133 : vector<8x32xf32>
    %c4_i32 = arith.constant 4 : i32
    %135 = vector.broadcast %c4_i32 : i32 to vector<8x1xi32>
    %136 = arith.cmpi sgt, %6, %135 : vector<8x1xi32>
    %137 = vector.shape_cast %136 : vector<8x1xi1> to vector<8x1xi1>
    %138 = vector.broadcast %137 : vector<8x1xi1> to vector<8x32xi1>
    %139 = arith.select %138, %134, %113 : vector<8x32xi1>, vector<8x32xf32>
    %140 = vector.shape_cast %136 : vector<8x1xi1> to vector<8x1xi1>
    %141 = vector.broadcast %140 : vector<8x1xi1> to vector<8x32xi1>
    %142 = arith.select %141, %132, %116 : vector<8x32xi1>, vector<8x32xf32>
    %143 = vector.extract_strided_slice %10 {offsets = [40, 0], sizes = [8, 128], strides = [1, 1]} : vector<64x128xf32> to vector<8x128xf32>
    %cst_22 = arith.constant dense<0.000000e+00> : vector<8x128xf32>
    %144 = tpu.matmul %139, %1, %cst_22 {dimension_numbers = #tpu.dot_dimension_numbers<[1], [0], [0], [1], [0, 0, 1, 1], [], []>} : vector<8x32xf32>, vector<32x128xf32>, vector<8x128xf32> -> vector<8x128xf32>
    %145 = arith.addf %143, %144 : vector<8x128xf32>
    %146 = arith.negf %145 : vector<8x128xf32>
    %147 = math.exp %146 : vector<8x128xf32>
    %cst_23 = arith.constant 1.000000e+00 : f32
    %148 = vector.broadcast %cst_23 : f32 to vector<8x128xf32>
    %149 = arith.addf %148, %147 : vector<8x128xf32>
    %150 = arith.divf %148, %149 : vector<8x128xf32>
    %151 = math.tanh %145 : vector<8x128xf32>
    %152 = vector.extract_strided_slice %150 {offsets = [0, 0], sizes = [8, 32], strides = [1, 1]} : vector<8x128xf32> to vector<8x32xf32>
    %153 = vector.extract_strided_slice %150 {offsets = [0, 32], sizes = [8, 32], strides = [1, 1]} : vector<8x128xf32> to vector<8x32xf32>
    %154 = vector.extract_strided_slice %151 {offsets = [0, 64], sizes = [8, 32], strides = [1, 1]} : vector<8x128xf32> to vector<8x32xf32>
    %155 = vector.extract_strided_slice %150 {offsets = [0, 96], sizes = [8, 32], strides = [1, 1]} : vector<8x128xf32> to vector<8x32xf32>
    %156 = arith.mulf %153, %142 : vector<8x32xf32>
    %157 = arith.mulf %152, %154 : vector<8x32xf32>
    %158 = arith.addf %156, %157 : vector<8x32xf32>
    %159 = math.tanh %158 : vector<8x32xf32>
    %160 = arith.mulf %155, %159 : vector<8x32xf32>
    %c5_i32 = arith.constant 5 : i32
    %161 = vector.broadcast %c5_i32 : i32 to vector<8x1xi32>
    %162 = arith.cmpi sgt, %6, %161 : vector<8x1xi32>
    %163 = vector.shape_cast %162 : vector<8x1xi1> to vector<8x1xi1>
    %164 = vector.broadcast %163 : vector<8x1xi1> to vector<8x32xi1>
    %165 = arith.select %164, %160, %139 : vector<8x32xi1>, vector<8x32xf32>
    %166 = vector.shape_cast %162 : vector<8x1xi1> to vector<8x1xi1>
    %167 = vector.broadcast %166 : vector<8x1xi1> to vector<8x32xi1>
    %168 = arith.select %167, %158, %142 : vector<8x32xi1>, vector<8x32xf32>
    %169 = vector.extract_strided_slice %10 {offsets = [48, 0], sizes = [8, 128], strides = [1, 1]} : vector<64x128xf32> to vector<8x128xf32>
    %cst_24 = arith.constant dense<0.000000e+00> : vector<8x128xf32>
    %170 = tpu.matmul %165, %1, %cst_24 {dimension_numbers = #tpu.dot_dimension_numbers<[1], [0], [0], [1], [0, 0, 1, 1], [], []>} : vector<8x32xf32>, vector<32x128xf32>, vector<8x128xf32> -> vector<8x128xf32>
    %171 = arith.addf %169, %170 : vector<8x128xf32>
    %172 = arith.negf %171 : vector<8x128xf32>
    %173 = math.exp %172 : vector<8x128xf32>
    %cst_25 = arith.constant 1.000000e+00 : f32
    %174 = vector.broadcast %cst_25 : f32 to vector<8x128xf32>
    %175 = arith.addf %174, %173 : vector<8x128xf32>
    %176 = arith.divf %174, %175 : vector<8x128xf32>
    %177 = math.tanh %171 : vector<8x128xf32>
    %178 = vector.extract_strided_slice %176 {offsets = [0, 0], sizes = [8, 32], strides = [1, 1]} : vector<8x128xf32> to vector<8x32xf32>
    %179 = vector.extract_strided_slice %176 {offsets = [0, 32], sizes = [8, 32], strides = [1, 1]} : vector<8x128xf32> to vector<8x32xf32>
    %180 = vector.extract_strided_slice %177 {offsets = [0, 64], sizes = [8, 32], strides = [1, 1]} : vector<8x128xf32> to vector<8x32xf32>
    %181 = vector.extract_strided_slice %176 {offsets = [0, 96], sizes = [8, 32], strides = [1, 1]} : vector<8x128xf32> to vector<8x32xf32>
    %182 = arith.mulf %179, %168 : vector<8x32xf32>
    %183 = arith.mulf %178, %180 : vector<8x32xf32>
    %184 = arith.addf %182, %183 : vector<8x32xf32>
    %185 = math.tanh %184 : vector<8x32xf32>
    %186 = arith.mulf %181, %185 : vector<8x32xf32>
    %c6_i32 = arith.constant 6 : i32
    %187 = vector.broadcast %c6_i32 : i32 to vector<8x1xi32>
    %188 = arith.cmpi sgt, %6, %187 : vector<8x1xi32>
    %189 = vector.shape_cast %188 : vector<8x1xi1> to vector<8x1xi1>
    %190 = vector.broadcast %189 : vector<8x1xi1> to vector<8x32xi1>
    %191 = arith.select %190, %186, %165 : vector<8x32xi1>, vector<8x32xf32>
    %192 = vector.shape_cast %188 : vector<8x1xi1> to vector<8x1xi1>
    %193 = vector.broadcast %192 : vector<8x1xi1> to vector<8x32xi1>
    %194 = arith.select %193, %184, %168 : vector<8x32xi1>, vector<8x32xf32>
    %195 = vector.extract_strided_slice %10 {offsets = [56, 0], sizes = [8, 128], strides = [1, 1]} : vector<64x128xf32> to vector<8x128xf32>
    %cst_26 = arith.constant dense<0.000000e+00> : vector<8x128xf32>
    %196 = tpu.matmul %191, %1, %cst_26 {dimension_numbers = #tpu.dot_dimension_numbers<[1], [0], [0], [1], [0, 0, 1, 1], [], []>} : vector<8x32xf32>, vector<32x128xf32>, vector<8x128xf32> -> vector<8x128xf32>
    %197 = arith.addf %195, %196 : vector<8x128xf32>
    %198 = arith.negf %197 : vector<8x128xf32>
    %199 = math.exp %198 : vector<8x128xf32>
    %cst_27 = arith.constant 1.000000e+00 : f32
    %200 = vector.broadcast %cst_27 : f32 to vector<8x128xf32>
    %201 = arith.addf %200, %199 : vector<8x128xf32>
    %202 = arith.divf %200, %201 : vector<8x128xf32>
    %203 = math.tanh %197 : vector<8x128xf32>
    %204 = vector.extract_strided_slice %202 {offsets = [0, 0], sizes = [8, 32], strides = [1, 1]} : vector<8x128xf32> to vector<8x32xf32>
    %205 = vector.extract_strided_slice %202 {offsets = [0, 32], sizes = [8, 32], strides = [1, 1]} : vector<8x128xf32> to vector<8x32xf32>
    %206 = vector.extract_strided_slice %203 {offsets = [0, 64], sizes = [8, 32], strides = [1, 1]} : vector<8x128xf32> to vector<8x32xf32>
    %207 = vector.extract_strided_slice %202 {offsets = [0, 96], sizes = [8, 32], strides = [1, 1]} : vector<8x128xf32> to vector<8x32xf32>
    %208 = arith.mulf %205, %194 : vector<8x32xf32>
    %209 = arith.mulf %204, %206 : vector<8x32xf32>
    %210 = arith.addf %208, %209 : vector<8x32xf32>
    %211 = math.tanh %210 : vector<8x32xf32>
    %212 = arith.mulf %207, %211 : vector<8x32xf32>
    %c7_i32 = arith.constant 7 : i32
    %213 = vector.broadcast %c7_i32 : i32 to vector<8x1xi32>
    %214 = arith.cmpi sgt, %6, %213 : vector<8x1xi32>
    %215 = vector.shape_cast %214 : vector<8x1xi1> to vector<8x1xi1>
    %216 = vector.broadcast %215 : vector<8x1xi1> to vector<8x32xi1>
    %217 = arith.select %216, %212, %191 : vector<8x32xi1>, vector<8x32xf32>
    %cst_28 = arith.constant dense<0.000000e+00> : vector<8x128xf32>
    %218 = tpu.matmul %217, %3, %cst_28 {dimension_numbers = #tpu.dot_dimension_numbers<[1], [0], [0], [1], [0, 0, 1, 1], [], []>} : vector<8x32xf32>, vector<32x128xf32>, vector<8x128xf32> -> vector<8x128xf32>
    %219 = vector.broadcast %4 : vector<1x128xf32> to vector<8x128xf32>
    %220 = arith.addf %218, %219 : vector<8x128xf32>
    %cst_29 = arith.constant dense<0xFF800000> : vector<8xf32>
    %221 = vector.multi_reduction <maximumf>, %220, %cst_29 [1] : vector<8x128xf32> to vector<8xf32>
    %222 = vector.shape_cast %221 : vector<8xf32> to vector<8x1xf32>
    %223 = vector.broadcast %222 : vector<8x1xf32> to vector<8x128xf32>
    %224 = arith.subf %220, %223 : vector<8x128xf32>
    %225 = math.exp %224 : vector<8x128xf32>
    %cst_30 = arith.constant dense<0.000000e+00> : vector<8x128xf32>
    %226 = tpu.matmul %225, %5, %cst_30 {dimension_numbers = #tpu.dot_dimension_numbers<[1], [0], [0], [1], [0, 0, 1, 1], [], []>} : vector<8x128xf32>, vector<128x128xf32>, vector<8x128xf32> -> vector<8x128xf32>
    %227 = vector.broadcast %222 : vector<8x1xf32> to vector<8x128xf32>
    %228 = arith.subf %220, %227 : vector<8x128xf32>
    %229 = math.log %226 : vector<8x128xf32>
    %230 = arith.subf %228, %229 : vector<8x128xf32>
    %c0_31 = arith.constant 0 : index
    %c0_32 = arith.constant 0 : index
    %231 = vector.load %arg3[%c0_31, %c0_32] : memref<8x128xf32, #tpu.memory_space<vmem>>, vector<8x128xf32>
    tpu.vector_store %arg3[%c0_31, %c0_32], %230 {strides = array<i32>} : memref<8x128xf32, #tpu.memory_space<vmem>>, vector<8x128xf32>,
    return
  }
}

</mosaic_0001>

<bundles_post_ra>
// kernel: tpu_custom_call.1
= control target key start
LH: loop header
LB: loop body
LE: loop exit
PB: predicated region body
PF: predicated region fallthrough
CT: control target
= control target key end

     0   :  { %8 = vsyncpa [#allocation3], 0  ;;  %s1136_s0 = inlined_call_operand.vmem [shape: f32[64,16], index: 0, kind: input, shape index: {}]   ;;  %s1137_s1 = inlined_call_operand.vmem [shape: s32[8,1], index: 1, kind: input, shape index: {}]   ;;  %s1138_s2 = inlined_call_operand.hbm [shape: f32[224,128], index: 2, kind: input, shape index: {}]   ;;  %s1139_s3 = inlined_call_operand.hbm [shape: f32[8,128], index: 3, kind: output, shape index: {}]  }
   0x1   :  { %9 = vsyncpa [#allocation4], 0  ;;  %s18_s14 = sshll.u32 %s1138_s2, 4  ;;  %s932_s15 = smov [#allocation2]   ;;  %s19_s14 = int_to_ptr.hbm [resolvable:$true] %s18_s14 }
   0x2   :  { %s20_s16 = sshll.u32 %s932_s15, 4  ;;  %s933_s17 = smov 128   ;;  %s21_s16 = int_to_ptr.vmem [resolvable:$true] %s20_s16 }
   0x3   :  { %s934_s18 = smov 8  }
   0x4   :  { %26 = dma.hbm_to_vmem [thread:$0]  %s19_s14, 3584, %s21_s16, [#allocation3], %s933_s17, %s933_s17, %s934_s18  }
   0x5   :  { %928 = dma.done.wait [#allocation3], 3584  }
   0x6   :  { %929 = vsyncadd [#allocation3], 4294963712  ;;  %v963_v0 = vld [vmem:[#allocation2 + $0x28] sm:$0xff]  ;;  %v965_v1 = vld [vmem:[#allocation2 + $0x20] sm:$0xff]  ;;  %vm69_vm0 = vcmask 130048   ;;  %v935_v7 = vmov 0.0  }
   0x7   :  { %151 = vmatpush.msra.mxu3 %v963_v0  ;;  %v32_v2 = vld [vmem:[#allocation2 + $0x8] sm:$0xff]  ;;  %v31_v3 = vld [vmem:[#allocation2] sm:$0xff]  ;;  %577 = vmatpush.msra.mxu1 %v963_v0  ;;  %v969_v4 = vld [vmem:[#allocation2 + $0x18] sm:$0xff]  ;;  %s936_s20 = smov 64   ;;  %s937_s21 = smov 32   ;;  %v938_v29 = vmov 0  }
   0x8   :  { %108 = vmatpush.msra.mxu0 %v32_v2  ;;  %v60_v5 = vld [vmem:[%s1136_s0] sm:$0xff]  ;;  %797 = vmatpush.msra.mxu2 %v32_v2  ;;  %v976_v6 = vld [vmem:[#allocation2 + $0x10] sm:$0xff]  ;;  %v67_v37 = vld [vmem:[%s1136_s0 + $0x38] sm:$0xff]  ;;  %vm135_vm7 = vcmask 261120   ;;  %s763_s13 = sshll.u32 %s1139_s3, 4  ;;  %s764_s13 = int_to_ptr.hbm [resolvable:$true] %s763_s13 }
   0x9   :  { %152 = vmatpush.msra.mxu3 %v965_v1  ;;  %578 = vmatpush.msra.mxu1 %v965_v1  ;;  %v995_v8 = vld [vmem:[#allocation2 + $0x30] ss:$0 sm:$0xff]  ;;  %v1009_v34 = vld [vmem:[%s1137_s1] sm:$0xff]  ;;  %v61_v42 = vld [vmem:[%s1136_s0 + $0x8] sm:$0xff] }
   0xa   :  { %109 = vmatpush.msra.mxu0 %v31_v3  ;;  %798 = vmatpush.msra.mxu2 %v31_v3  ;;  %vm197_vm5 = vcmp.gt.s32.totalorder %v1009_v34, 0  ;;  %v66_v36 = vld [vmem:[%s1136_s0 + $0x30] sm:$0xff]  ;;  %vm268_vm8 = vcmp.gt.s32.totalorder %v1009_v34, 1  ;;  %vm339_vm14 = vcmp.gt.s32.totalorder %v1009_v34, 2 }
   0xb   :  { %153 = vmatpush.msra.mxu3 %v969_v4  ;;  %773 = vmatmul.msk.f32.vlgmr.msra.gmra.mxu0 %vm69_vm0, %v60_v5  ;;  %v198_v35 = vsel %vm197_vm5, 1, %v938_v29  ;;  %v269_v54 = vsel %vm268_vm8, 1, %v938_v29  ;;  %vm410_vm5 = vcmp.gt.s32.totalorder %v1009_v34, 3 }
   0xc   :  { %222 = vmatpush.msrb.mxu2 %v963_v0  ;;  %579 = vmatpush.msra.mxu1 %v969_v4 }
   0xd   :  { %154 = vmatpush.msra.mxu3 %v976_v6  ;;  %807 = vset.pattern.permute.xlu1 %v938_v29 }
   0xe   :  { %155 = vmatmul.f32.vlgmr.msra.gmra.mxu3 %v935_v7  ;;  %223 = vmatpush.msrb.mxu2 %v965_v1 }
   0xf   :  { %293 = vmatpush.msrb.mxu3 %v963_v0  ;;  %580 = vmatpush.msra.mxu1 %v976_v6 }
  0x10   :  { %224 = vmatpush.msrb.mxu2 %v969_v4  ;;  %808 = vset.pattern.permute.xlu2 %v938_v29 }
  0x11   :  { %294 = vmatpush.msrb.mxu3 %v965_v1  ;;  %809 = vset.pattern.permute.xlu0 %v938_v29 }
  0x12   :  { %225 = vmatpush.msrb.mxu2 %v976_v6 }
  0x13   :  { %295 = vmatpush.msrb.mxu3 %v969_v4  ;;  %779 = vmatmul.msk.f32.vlgmr.msra.gmra.mxu2 %vm69_vm0, %v66_v36 }
  0x14   :  { %435 = vmatpush.msra.mxu2 %v963_v0  ;;  %774 = vmatmul.msk.f32.gmra.mxu0 %vm69_vm0, %v61_v42 }
  0x15   :  { %296 = vmatpush.msrb.mxu3 %v976_v6 }
  0x16   :  { %436 = vmatpush.msra.mxu2 %v965_v1 }
  0x17   :  { %364 = vmatpush.msra.mxu3 %v963_v0 }
  0x18   :  { %437 = vmatpush.msra.mxu2 %v969_v4 }
  0x19   :  { %365 = vmatpush.msra.mxu3 %v965_v1 }
  0x1a   :  { %438 = vmatpush.msra.mxu2 %v976_v6 }
  0x1b   :  { %366 = vmatpush.msra.mxu3 %v969_v4  ;;  %780 = vmatmul.msk.f32.gmra.mxu2 %vm69_vm0, %v67_v37 }
  0x1d   :  { %367 = vmatpush.msra.mxu3 %v976_v6 }
  0x88   :  { %v111_v9 = vpop.f32.mrf.mxu0 }
  0x89   :  { %v112_v10 = vadd.f32 %v995_v8, %v111_v9 }
  0x91   :  { %v156_v11 = vpop.f32.mrf.mxu3  ;;  %v114_v46 = vpop.f32.mrf.mxu0 }
  0x92   :  { %v159_v12 = vadd.f32 %v156_v11, %v112_v10  ;;  %v115_v47 = vadd.f32 %v995_v8, %v114_v46 }
  0x94   :  { %812 = vtanh.f32 %v159_v12  ;;  %v781_v14 = vmul.f32 -1.442695, %v159_v12 }
  0x96   :  { %814 = vpow2.f32 %v781_v14  ;;  %v1037_v44 = vpop.f32.mrf.mxu2 }
  0x9a   :  { %v813_v13 = vpop.eup %812 }
  0x9b   :  { %182 = vrot.lane.b32.xlu0 %v813_v13, %s936_s20 }
  0x9c   :  { %v815_v15 = vpop.eup %814 }
  0x9d   :  { %v163_v16 = vadd.f32 1.0, %v815_v15 }
  0x9e   :  { %v1039_v45 = vpop.f32.mrf.mxu2 }
  0x9f   :  { %816 = vrcp.f32 %v163_v16  ;;  %v175_v22 = vand.u32 2147483648, %v163_v16  ;;  %vm169_vm2 = vweird.f32 %v163_v16  ;;  %v173_v23 = vand.u32 2147483647, %v163_v16 }
  0xa1   :  { %v176_v25 = vor.u32 1.1754944e-38, %v175_v22  ;;  %vm174_vm4 = vcmp.eq.f32.partialorder %v173_v23, 8.507059e+37 }
  0xa5   :  { %v817_v17 = vpop.eup %816 }
  0xa6   :  { %v165_v18 = vmul.f32 %v817_v17, %v163_v16  ;;  %vm170_vm1 = vweird.f32 %v817_v17 }
  0xa7   :  { %vm171_vm3 = vmor %vm169_vm2, %vm170_vm1 }
  0xa8   :  { %v166_v19 = vsub.f32 1.0, %v165_v18 }
  0xaa   :  { %v167_v20 = vmul.f32 %v817_v17, %v166_v19 }
  0xac   :  { %v168_v21 = vadd.f32 %v817_v17, %v167_v20 }
  0xae   :  { %v172_v24 = vsel %vm171_vm3, %v817_v17, %v168_v21  ;;  %v62_v17 = vld [vmem:[%s1136_s0 + $0x10] sm:$0xff] }
  0xaf   :  { %v177_v27 = vsel %vm174_vm4, %v176_v25, %v172_v24  ;;  %775 = vmatmul.msk.f32.gmra.mxu0 %vm69_vm0, %v62_v17  ;;  %v340_v24 = vsel %vm339_vm14, 1, %v938_v29 }
  0xb0   :  { %v180_v30 = vmul.f32 0.0, %v177_v27 }
 0x10d   :  { %v183_v26 = vpop.permute.xlu0 %182 }
 0x10e   :  { %v185_v28 = vmul.f32 %v183_v26, %v177_v27 }
 0x110   :  { %187 = vrot.lane.b32.xlu0 %v185_v28, %s937_s21 }
 0x12c   :  { %v117_v19 = vpop.f32.mrf.mxu0 }
 0x12d   :  { %v118_v20 = vadd.f32 %v995_v8, %v117_v19 }
 0x182   :  { %v188_v31 = vpop.permute.xlu0 %187 }
 0x183   :  { %v1003_v32 = vadd.f32 %v188_v31, %v180_v30 }
 0x185   :  { %818 = vtanh.f32 %v1003_v32 }
 0x18b   :  { %v819_v33 = vpop.eup %818 }
 0x18c   :  { %193 = vrot.lane.b32.xlu1 %v819_v33, %s936_s20 }
 0x194   :  { %200 = vperm.xlu1 %807, %v198_v35  }
 0x1fe   :  { %v194_v38 = vpop.permute.xlu1 %193 }
 0x1ff   :  { %v196_v39 = vmul.f32 %v194_v38, %v177_v27 }
 0x206   :  { %v201_v40 = vpop.permute.xlu1 %200 }
 0x207   :  { %vm202_vm6 = vcmp.eq.s32.totalorder %v201_v40, 1 }
 0x208   :  { %v203_v41 = vsel %vm202_vm6, %v196_v39, 0.0  ;;  %v204_v7 = vsel %vm202_vm6, %v1003_v32, 0.0  ;;  %vm481_vm6 = vcmp.gt.s32.totalorder %v1009_v34, 4 }
 0x209   :  { %206 = vrot.lane.b32.xlu2 %v203_v41, %s937_s21 }
 0x263   :  { %v207_v43 = vpop.permute.xlu2 %206 }
 0x264   :  { %782 = vmatmul.msk.f32.vlgmr.msrb.gmra.mxu2 %vm135_vm7, %v207_v43 }
 0x265   :  { %648 = vmatpush.msrb.mxu2 %v963_v0 }
 0x267   :  { %649 = vmatpush.msrb.mxu2 %v965_v1 }
 0x269   :  { %650 = vmatpush.msrb.mxu2 %v969_v4 }
 0x26b   :  { %651 = vmatpush.msrb.mxu2 %v976_v6 }
 0x2e7   :  { %v227_v48 = vpop.f32.mrf.mxu2 }
 0x2e8   :  { %v230_v49 = vadd.f32 %v227_v48, %v115_v47 }
 0x2ea   :  { %820 = vtanh.f32 %v230_v49  ;;  %v783_v51 = vmul.f32 -1.442695, %v230_v49  ;;  %v63_v49 = vld [vmem:[%s1136_s0 + $0x18] sm:$0xff] }
 0x2eb   :  { %776 = vmatmul.msk.f32.gmra.mxu0 %vm69_vm0, %v63_v49 }
 0x2ec   :  { %822 = vpow2.f32 %v783_v51 }
 0x2f0   :  { %v821_v50 = vpop.eup %820 }
 0x2f1   :  { %253 = vrot.lane.b32.xlu2 %v821_v50, %s936_s20 }
 0x2f2   :  { %v823_v52 = vpop.eup %822 }
 0x2f3   :  { %v234_v53 = vadd.f32 1.0, %v823_v52 }
 0x2f5   :  { %824 = vrcp.f32 %v234_v53  ;;  %v246_v60 = vand.u32 2147483648, %v234_v53  ;;  %vm240_vm10 = vweird.f32 %v234_v53  ;;  %v244_v61 = vand.u32 2147483647, %v234_v53 }
 0x2f7   :  { %v247_v63 = vor.u32 1.1754944e-38, %v246_v60  ;;  %vm245_vm12 = vcmp.eq.f32.partialorder %v244_v61, 8.507059e+37  ;;  %v482_v60 = vsel %vm481_vm6, 1, %v938_v29 }
 0x2f9   :  { %271 = vperm.xlu2 %808, %v269_v54  }
 0x2fb   :  { %v825_v55 = vpop.eup %824 }
 0x2fc   :  { %v236_v56 = vmul.f32 %v825_v55, %v234_v53  ;;  %vm241_vm9 = vweird.f32 %v825_v55 }
 0x2fd   :  { %vm242_vm11 = vmor %vm240_vm10, %vm241_vm9 }
 0x2fe   :  { %v237_v57 = vsub.f32 1.0, %v236_v56 }
 0x300   :  { %v238_v58 = vmul.f32 %v825_v55, %v237_v57 }
 0x302   :  { %v239_v59 = vadd.f32 %v825_v55, %v238_v58 }
 0x304   :  { %v243_v62 = vsel %vm242_vm11, %v825_v55, %v239_v59  ;;  %v411_v59 = vsel %vm410_vm5, 1, %v938_v29 }
 0x305   :  { %v248_v3 = vsel %vm245_vm12, %v247_v63, %v243_v62 }
 0x306   :  { %v251_v9 = vmul.f32 %v248_v3, %v204_v7 }
 0x34b   :  { %v254_v2 = vpop.permute.xlu2 %253 }
 0x34c   :  { %v256_v5 = vmul.f32 %v254_v2, %v248_v3 }
 0x34e   :  { %258 = vrot.lane.b32.xlu0 %v256_v5, %s937_s21 }
 0x353   :  { %v272_v13 = vpop.permute.xlu2 %271 }
 0x354   :  { %vm273_vm13 = vcmp.eq.s32.totalorder %v272_v13, 1 }
 0x368   :  { %v120_v51 = vpop.f32.mrf.mxu0 }
 0x369   :  { %v121_v52 = vadd.f32 %v995_v8, %v120_v51 }
 0x3c0   :  { %v259_v10 = vpop.permute.xlu0 %258 }
 0x3c1   :  { %v261_v11 = vadd.f32 %v259_v10, %v251_v9 }
 0x3c3   :  { %826 = vtanh.f32 %v261_v11  ;;  %v275_v38 = vsel %vm273_vm13, %v261_v11, %v204_v7 }
 0x3c9   :  { %v827_v12 = vpop.eup %826 }
 0x3ca   :  { %264 = vrot.lane.b32.xlu1 %v827_v12, %s936_s20 }
 0x43c   :  { %v265_v14 = vpop.permute.xlu1 %264 }
 0x43d   :  { %v267_v15 = vmul.f32 %v265_v14, %v248_v3 }
 0x43f   :  { %v274_v16 = vsel %vm273_vm13, %v267_v15, %v203_v41 }
 0x440   :  { %277 = vrot.lane.b32.xlu0 %v274_v16, %s937_s21 }
 0x4b2   :  { %v278_v18 = vpop.permute.xlu0 %277 }
 0x4b3   :  { %784 = vmatmul.msk.f32.vlgmr.msrb.gmra.mxu3 %vm135_vm7, %v278_v18 }
 0x4b4   :  { %506 = vmatpush.msrb.mxu3 %v963_v0 }
 0x4b6   :  { %507 = vmatpush.msrb.mxu3 %v965_v1 }
 0x4b8   :  { %508 = vmatpush.msrb.mxu3 %v969_v4 }
 0x4ba   :  { %509 = vmatpush.msrb.mxu3 %v976_v6 }
 0x536   :  { %v298_v21 = vpop.f32.mrf.mxu3 }
 0x537   :  { %v301_v22 = vadd.f32 %v298_v21, %v118_v20 }
 0x539   :  { %828 = vtanh.f32 %v301_v22  ;;  %v785_v0 = vmul.f32 -1.442695, %v301_v22 }
 0x53b   :  { %830 = vpow2.f32 %v785_v0 }
 0x53f   :  { %v829_v23 = vpop.eup %828 }
 0x540   :  { %324 = vrot.lane.b32.xlu1 %v829_v23, %s936_s20  ;;  %v64_v23 = vld [vmem:[%s1136_s0 + $0x20] sm:$0xff] }
 0x541   :  { %v831_v1 = vpop.eup %830  ;;  %777 = vmatmul.msk.f32.gmra.mxu0 %vm69_vm0, %v64_v23 }
 0x542   :  { %v305_v4 = vadd.f32 1.0, %v831_v1 }
 0x544   :  { %832 = vrcp.f32 %v305_v4  ;;  %v317_v30 = vand.u32 2147483648, %v305_v4  ;;  %vm311_vm1 = vweird.f32 %v305_v4  ;;  %v315_v31 = vand.u32 2147483647, %v305_v4 }
 0x546   :  { %v318_v33 = vor.u32 1.1754944e-38, %v317_v30  ;;  %vm316_vm3 = vcmp.eq.f32.partialorder %v315_v31, 8.507059e+37 }
 0x548   :  { %342 = vperm.xlu1 %807, %v340_v24  }
 0x54a   :  { %v833_v6 = vpop.eup %832 }
 0x54b   :  { %v307_v25 = vmul.f32 %v833_v6, %v305_v4  ;;  %vm312_vm15 = vweird.f32 %v833_v6 }
 0x54c   :  { %vm313_vm2 = vmor %vm311_vm1, %vm312_vm15 }
 0x54d   :  { %v308_v26 = vsub.f32 1.0, %v307_v25 }
 0x54f   :  { %v309_v27 = vmul.f32 %v833_v6, %v308_v26 }
 0x551   :  { %v310_v28 = vadd.f32 %v833_v6, %v309_v27 }
 0x553   :  { %v314_v32 = vsel %vm313_vm2, %v833_v6, %v310_v28 }
 0x554   :  { %v319_v36 = vsel %vm316_vm3, %v318_v33, %v314_v32  ;;  %vm552_vm3 = vcmp.gt.s32.totalorder %v1009_v34, 5 }
 0x555   :  { %v322_v39 = vmul.f32 %v319_v36, %v275_v38 }
 0x5b2   :  { %v325_v35 = vpop.permute.xlu1 %324 }
 0x5b3   :  { %v327_v37 = vmul.f32 %v325_v35, %v319_v36 }
 0x5b5   :  { %329 = vrot.lane.b32.xlu2 %v327_v37, %s937_s21 }
 0x5ba   :  { %v343_v43 = vpop.permute.xlu1 %342 }
 0x5bb   :  { %vm344_vm4 = vcmp.eq.s32.totalorder %v343_v43, 1 }
 0x5be   :  { %v123_v0 = vpop.f32.mrf.mxu0 }
 0x5bf   :  { %v124_v1 = vadd.f32 %v995_v8, %v123_v0 }
 0x60f   :  { %v330_v40 = vpop.permute.xlu2 %329 }
 0x610   :  { %v332_v41 = vadd.f32 %v330_v40, %v322_v39 }
 0x612   :  { %834 = vtanh.f32 %v332_v41  ;;  %v346_v14 = vsel %vm344_vm4, %v332_v41, %v275_v38 }
 0x618   :  { %v835_v42 = vpop.eup %834 }
 0x619   :  { %335 = vrot.lane.b32.xlu0 %v835_v42, %s936_s20 }
 0x68b   :  { %v336_v46 = vpop.permute.xlu0 %335 }
 0x68c   :  { %v338_v47 = vmul.f32 %v336_v46, %v319_v36 }
 0x68e   :  { %v345_v48 = vsel %vm344_vm4, %v338_v47, %v274_v16 }
 0x68f   :  { %348 = vrot.lane.b32.xlu2 %v345_v48, %s937_s21 }
 0x6e9   :  { %v349_v50 = vpop.permute.xlu2 %348 }
 0x6ea   :  { %786 = vmatmul.msk.f32.vlgmr.msra.gmra.mxu3 %vm135_vm7, %v349_v50 }
 0x76d   :  { %v369_v53 = vpop.f32.mrf.mxu3 }
 0x76e   :  { %v372_v54 = vadd.f32 %v369_v53, %v121_v52 }
 0x770   :  { %836 = vtanh.f32 %v372_v54  ;;  %v787_v56 = vmul.f32 -1.442695, %v372_v54  ;;  %v65_v54 = vld [vmem:[%s1136_s0 + $0x28] sm:$0xff]  ;;  %s939_s0 = smov [#allocation5]  }
 0x771   :  { %778 = vmatmul.msk.f32.gmra.mxu0 %vm69_vm0, %v65_v54  ;;  %s761_s10 = sshll.u32 %s939_s0, 4  ;;  %s762_s10 = int_to_ptr.vmem [resolvable:$true] %s761_s10 }
 0x772   :  { %838 = vpow2.f32 %v787_v56 }
 0x776   :  { %v837_v55 = vpop.eup %836 }
 0x777   :  { %395 = vrot.lane.b32.xlu0 %v837_v55, %s936_s20 }
 0x778   :  { %v839_v57 = vpop.eup %838 }
 0x779   :  { %v376_v58 = vadd.f32 1.0, %v839_v57 }
 0x77b   :  { %840 = vrcp.f32 %v376_v58  ;;  %v388_v5 = vand.u32 2147483648, %v376_v58  ;;  %vm382_vm9 = vweird.f32 %v376_v58  ;;  %v386_v7 = vand.u32 2147483647, %v376_v58 }
 0x77d   :  { %v389_v10 = vor.u32 1.1754944e-38, %v388_v5  ;;  %vm387_vm11 = vcmp.eq.f32.partialorder %v386_v7, 8.507059e+37 }
 0x77f   :  { %413 = vperm.xlu0 %809, %v411_v59  }
 0x781   :  { %v841_v61 = vpop.eup %840 }
 0x782   :  { %v378_v62 = vmul.f32 %v841_v61, %v376_v58  ;;  %vm383_vm8 = vweird.f32 %v841_v61 }
 0x783   :  { %vm384_vm10 = vmor %vm382_vm9, %vm383_vm8  ;;  %vm623_vm9 = vcmp.gt.s32.totalorder %v1009_v34, 6 }
 0x784   :  { %v379_v63 = vsub.f32 1.0, %v378_v62 }
 0x786   :  { %v380_v2 = vmul.f32 %v841_v61, %v379_v63 }
 0x787   :  { %484 = vperm.xlu0 %809, %v482_v60  }
 0x788   :  { %v381_v3 = vadd.f32 %v841_v61, %v380_v2 }
 0x78a   :  { %v385_v9 = vsel %vm384_vm10, %v841_v61, %v381_v3  ;;  %v553_v61 = vsel %vm552_vm3, 1, %v938_v29 }
 0x78b   :  { %v390_v12 = vsel %vm387_vm11, %v389_v10, %v385_v9 }
 0x78c   :  { %v393_v15 = vmul.f32 %v390_v12, %v346_v14 }
 0x7e9   :  { %v396_v11 = vpop.permute.xlu0 %395 }
 0x7ea   :  { %v398_v13 = vmul.f32 %v396_v11, %v390_v12 }
 0x7ec   :  { %400 = vrot.lane.b32.xlu1 %v398_v13, %s937_s21 }
 0x7ee   :  { %v126_v56 = vpop.f32.mrf.mxu0 }
 0x7ef   :  { %v127_v57 = vadd.f32 %v995_v8, %v126_v56 }
 0x7f1   :  { %v414_v19 = vpop.permute.xlu0 %413 }
 0x7f2   :  { %vm415_vm12 = vcmp.eq.s32.totalorder %v414_v19, 1 }
 0x7f9   :  { %v485_v50 = vpop.permute.xlu0 %484 }
 0x7fa   :  { %vm486_vm2 = vcmp.eq.s32.totalorder %v485_v50, 1 }
 0x85e   :  { %v401_v16 = vpop.permute.xlu1 %400 }
 0x85f   :  { %v403_v17 = vadd.f32 %v401_v16, %v393_v15 }
 0x861   :  { %842 = vtanh.f32 %v403_v17  ;;  %v417_v43 = vsel %vm415_vm12, %v403_v17, %v346_v14 }
 0x867   :  { %v843_v18 = vpop.eup %842 }
 0x868   :  { %406 = vrot.lane.b32.xlu2 %v843_v18, %s936_s20 }
 0x8c2   :  { %v407_v20 = vpop.permute.xlu2 %406 }
 0x8c3   :  { %v409_v21 = vmul.f32 %v407_v20, %v390_v12 }
 0x8c5   :  { %v416_v22 = vsel %vm415_vm12, %v409_v21, %v345_v48 }
 0x8c6   :  { %419 = vrot.lane.b32.xlu1 %v416_v22, %s937_s21 }
 0x938   :  { %v420_v24 = vpop.permute.xlu1 %419 }
 0x939   :  { %788 = vmatmul.msk.f32.vlgmr.msra.gmra.mxu2 %vm135_vm7, %v420_v24 }
 0x9bc   :  { %v440_v4 = vpop.f32.mrf.mxu2 }
 0x9bd   :  { %v443_v6 = vadd.f32 %v440_v4, %v124_v1 }
 0x9bf   :  { %844 = vtanh.f32 %v443_v6  ;;  %v789_v26 = vmul.f32 -1.442695, %v443_v6  ;;  %v130_v6 = vadd.f32 %v995_v8, %v1037_v44 }
 0x9c1   :  { %846 = vpow2.f32 %v789_v26 }
 0x9c5   :  { %v845_v25 = vpop.eup %844 }
 0x9c6   :  { %466 = vrot.lane.b32.xlu2 %v845_v25, %s936_s20 }
 0x9c7   :  { %v847_v27 = vpop.eup %846 }
 0x9c8   :  { %v447_v28 = vadd.f32 1.0, %v847_v27 }
 0x9ca   :  { %848 = vrcp.f32 %v447_v28  ;;  %v459_v36 = vand.u32 2147483648, %v447_v28  ;;  %vm453_vm14 = vweird.f32 %v447_v28  ;;  %v457_v37 = vand.u32 2147483647, %v447_v28 }
 0x9cc   :  { %v460_v39 = vor.u32 1.1754944e-38, %v459_v36  ;;  %vm458_vm1 = vcmp.eq.f32.partialorder %v457_v37, 8.507059e+37 }
 0x9d0   :  { %v849_v30 = vpop.eup %848 }
 0x9d1   :  { %v449_v31 = vmul.f32 %v849_v30, %v447_v28  ;;  %vm454_vm13 = vweird.f32 %v849_v30  ;;  %v624_v28 = vsel %vm623_vm9, 1, %v938_v29 }
 0x9d2   :  { %vm455_vm15 = vmor %vm453_vm14, %vm454_vm13 }
 0x9d3   :  { %v450_v32 = vsub.f32 1.0, %v449_v31 }
 0x9d5   :  { %v451_v33 = vmul.f32 %v849_v30, %v450_v32 }
 0x9d7   :  { %v452_v35 = vadd.f32 %v849_v30, %v451_v33 }
 0x9d9   :  { %v456_v38 = vsel %vm455_vm15, %v849_v30, %v452_v35  ;;  %vm694_vm15 = vcmp.gt.s32.totalorder %v1009_v34, 7 }
 0x9da   :  { %v461_v41 = vsel %vm458_vm1, %v460_v39, %v456_v38 }
 0x9db   :  { %v464_v46 = vmul.f32 %v461_v41, %v417_v43 }
 0xa20   :  { %v467_v40 = vpop.permute.xlu2 %466 }
 0xa21   :  { %v469_v42 = vmul.f32 %v467_v40, %v461_v41 }
 0xa23   :  { %471 = vrot.lane.b32.xlu1 %v469_v42, %s937_s21 }
 0xa95   :  { %v472_v47 = vpop.permute.xlu1 %471 }
 0xa96   :  { %v474_v48 = vadd.f32 %v472_v47, %v464_v46 }
 0xa98   :  { %850 = vtanh.f32 %v474_v48  ;;  %v488_v18 = vsel %vm486_vm2, %v474_v48, %v417_v43 }
 0xa9e   :  { %v851_v49 = vpop.eup %850 }
 0xa9f   :  { %477 = vrot.lane.b32.xlu2 %v851_v49, %s936_s20 }
 0xaf9   :  { %v478_v51 = vpop.permute.xlu2 %477 }
 0xafa   :  { %v480_v52 = vmul.f32 %v478_v51, %v461_v41 }
 0xafc   :  { %v487_v53 = vsel %vm486_vm2, %v480_v52, %v416_v22 }
 0xafd   :  { %490 = vrot.lane.b32.xlu1 %v487_v53, %s937_s21 }
 0xb6f   :  { %v491_v55 = vpop.permute.xlu1 %490 }
 0xb70   :  { %790 = vmatmul.msk.f32.vlgmr.msrb.gmra.mxu3 %vm135_vm7, %v491_v55 }
 0xbf3   :  { %v511_v58 = vpop.f32.mrf.mxu3 }
 0xbf4   :  { %v514_v59 = vadd.f32 %v511_v58, %v127_v57  ;;  %v133_v57 = vadd.f32 %v995_v8, %v1039_v45 }
 0xbf6   :  { %852 = vtanh.f32 %v514_v59  ;;  %v791_v62 = vmul.f32 -1.442695, %v514_v59 }
 0xbf8   :  { %854 = vpow2.f32 %v791_v62 }
 0xbfc   :  { %v853_v60 = vpop.eup %852 }
 0xbfd   :  { %537 = vrot.lane.b32.xlu2 %v853_v60, %s936_s20 }
 0xbfe   :  { %v855_v63 = vpop.eup %854 }
 0xbff   :  { %v518_v2 = vadd.f32 1.0, %v855_v63 }
 0xc01   :  { %856 = vrcp.f32 %v518_v2  ;;  %v530_v11 = vand.u32 2147483648, %v518_v2  ;;  %vm524_vm4 = vweird.f32 %v518_v2  ;;  %v528_v12 = vand.u32 2147483647, %v518_v2 }
 0xc03   :  { %v531_v14 = vor.u32 1.1754944e-38, %v530_v11  ;;  %vm529_vm6 = vcmp.eq.f32.partialorder %v528_v12, 8.507059e+37 }
 0xc05   :  { %555 = vperm.xlu2 %808, %v553_v61   ;;  %v695_v61 = vsel %vm694_vm15, 1, %v938_v29 }
 0xc07   :  { %v857_v3 = vpop.eup %856 }
 0xc08   :  { %v520_v5 = vmul.f32 %v857_v3, %v518_v2  ;;  %vm525_vm0 = vweird.f32 %v857_v3 }
 0xc09   :  { %vm526_vm5 = vmor %vm524_vm4, %vm525_vm0 }
 0xc0a   :  { %v521_v7 = vsub.f32 1.0, %v520_v5 }
 0xc0c   :  { %v522_v9 = vmul.f32 %v857_v3, %v521_v7 }
 0xc0e   :  { %v523_v10 = vadd.f32 %v857_v3, %v522_v9 }
 0xc10   :  { %v527_v13 = vsel %vm526_vm5, %v857_v3, %v523_v10 }
 0xc11   :  { %v532_v16 = vsel %vm529_vm6, %v531_v14, %v527_v13 }
 0xc12   :  { %v535_v19 = vmul.f32 %v532_v16, %v488_v18 }
 0xc57   :  { %v538_v15 = vpop.permute.xlu2 %537 }
 0xc58   :  { %v540_v17 = vmul.f32 %v538_v15, %v532_v16 }
 0xc5a   :  { %542 = vrot.lane.b32.xlu0 %v540_v17, %s937_s21 }
 0xc5f   :  { %v556_v23 = vpop.permute.xlu2 %555 }
 0xc60   :  { %vm557_vm8 = vcmp.eq.s32.totalorder %v556_v23, 1 }
 0xccc   :  { %v543_v20 = vpop.permute.xlu0 %542 }
 0xccd   :  { %v545_v21 = vadd.f32 %v543_v20, %v535_v19  ;;  %v41_v19 = vld [vmem:[#allocation2 + $0x50] sm:$0xff]  ;;  %v40_v20 = vld [vmem:[#allocation2 + $0x48] sm:$0xff] }
 0xcce   :  { %719 = vmatpush.msra.mxu3 %v41_v19 }
 0xccf   :  { %858 = vtanh.f32 %v545_v21  ;;  %v559_v47 = vsel %vm557_vm8, %v545_v21, %v488_v18  ;;  %v39_v21 = vld [vmem:[#allocation2 + $0x40] sm:$0xff] }
 0xcd0   :  { %720 = vmatpush.msra.mxu3 %v40_v20 }
 0xcd2   :  { %721 = vmatpush.msra.mxu3 %v39_v21 }
 0xcd5   :  { %v859_v22 = vpop.eup %858 }
 0xcd6   :  { %548 = vrot.lane.b32.xlu1 %v859_v22, %s936_s20  ;;  %v38_v22 = vld [vmem:[#allocation2 + $0x38] sm:$0xff] }
 0xcd7   :  { %722 = vmatpush.msra.mxu3 %v38_v22 }
 0xd48   :  { %v549_v24 = vpop.permute.xlu1 %548 }
 0xd49   :  { %v551_v0 = vmul.f32 %v549_v24, %v532_v16 }
 0xd4b   :  { %v558_v1 = vsel %vm557_vm8, %v551_v0, %v487_v53 }
 0xd4c   :  { %561 = vrot.lane.b32.xlu0 %v558_v1, %s937_s21 }
 0xdbe   :  { %v562_v4 = vpop.permute.xlu0 %561 }
 0xdbf   :  { %792 = vmatmul.msk.f32.vlgmr.msra.gmra.mxu1 %vm135_vm7, %v562_v4 }
 0xe3c   :  { %v582_v25 = vpop.f32.mrf.mxu1 }
 0xe3d   :  { %v585_v26 = vadd.f32 %v582_v25, %v130_v6  ;;  %v58_v6 = vld [vmem:[#allocation2 + $0xd8] sm:$0xff]  ;;  %v57_v25 = vld [vmem:[#allocation2 + $0xd0] sm:$0xff] }
 0xe3e   :  { %732 = vmatpush.msrb.mxu1 %v58_v6 }
 0xe3f   :  { %860 = vtanh.f32 %v585_v26  ;;  %v793_v30 = vmul.f32 -1.442695, %v585_v26  ;;  %v56_v26 = vld [vmem:[#allocation2 + $0xc8] sm:$0xff] }
 0xe40   :  { %733 = vmatpush.msrb.mxu1 %v57_v25 }
 0xe41   :  { %862 = vpow2.f32 %v793_v30  ;;  %v53_v30 = vld [vmem:[#allocation2 + $0xb0] sm:$0xff] }
 0xe42   :  { %734 = vmatpush.msrb.mxu1 %v56_v26 }
 0xe45   :  { %v861_v27 = vpop.eup %860 }
 0xe46   :  { %608 = vrot.lane.b32.xlu1 %v861_v27, %s936_s20  ;;  %v55_v27 = vld [vmem:[#allocation2 + $0xc0] sm:$0xff] }
 0xe47   :  { %v863_v31 = vpop.eup %862  ;;  %735 = vmatpush.msrb.mxu1 %v55_v27 }
 0xe48   :  { %v589_v32 = vadd.f32 1.0, %v863_v31  ;;  %v52_v31 = vld [vmem:[#allocation2 + $0xa8] sm:$0xff] }
 0xe4a   :  { %864 = vrcp.f32 %v589_v32  ;;  %v601_v38 = vand.u32 2147483648, %v589_v32  ;;  %vm595_vm11 = vweird.f32 %v589_v32  ;;  %v599_v39 = vand.u32 2147483647, %v589_v32 }
 0xe4c   :  { %v602_v41 = vor.u32 1.1754944e-38, %v601_v38  ;;  %vm600_vm13 = vcmp.eq.f32.partialorder %v599_v39, 8.507059e+37  ;;  %v48_v38 = vld [vmem:[#allocation2 + $0x88] sm:$0xff]  ;;  %v47_v39 = vld [vmem:[#allocation2 + $0x80] sm:$0xff] }
 0xe4e   :  { %626 = vperm.xlu1 %807, %v624_v28   ;;  %v54_v28 = vld [vmem:[#allocation2 + $0xb8] sm:$0xff] }
 0xe4f   :  { %736 = vmatpush.msrb.mxu1 %v54_v28 }
 0xe50   :  { %v865_v33 = vpop.eup %864 }
 0xe51   :  { %v591_v35 = vmul.f32 %v865_v33, %v589_v32  ;;  %vm596_vm10 = vweird.f32 %v865_v33  ;;  %737 = vmatpush.msrb.mxu1 %v53_v30  ;;  %v51_v32 = vld [vmem:[#allocation2 + $0xa0] sm:$0xff] }
 0xe52   :  { %vm597_vm12 = vmor %vm595_vm11, %vm596_vm10 }
 0xe53   :  { %v592_v36 = vsub.f32 1.0, %v591_v35  ;;  %738 = vmatpush.msrb.mxu1 %v52_v31  ;;  %v49_v35 = vld [vmem:[#allocation2 + $0x90] sm:$0xff] }
 0xe55   :  { %v593_v44 = vmul.f32 %v865_v33, %v592_v36  ;;  %739 = vmatpush.msrb.mxu1 %v51_v32  ;;  %v811_v36 = vld [vmem:[#allocation2 + $0x58] ss:$0 sm:$0xff] }
 0xe57   :  { %v594_v37 = vadd.f32 %v865_v33, %v593_v44 }
 0xe59   :  { %v598_v40 = vsel %vm597_vm12, %v865_v33, %v594_v37  ;;  %v50_v33 = vld [vmem:[#allocation2 + $0x98] sm:$0xff] }
 0xe5a   :  { %v603_v43 = vsel %vm600_vm13, %v602_v41, %v598_v40  ;;  %740 = vmatpush.msrb.mxu1 %v50_v33  ;;  %v46_v40 = vld [vmem:[#allocation2 + $0x78] sm:$0xff]  ;;  %v45_v41 = vld [vmem:[#allocation2 + $0x70] sm:$0xff] }
 0xe5b   :  { %v606_v48 = vmul.f32 %v603_v43, %v559_v47 }
 0xe5c   :  { %741 = vmatpush.msrb.mxu1 %v49_v35 }
 0xe5e   :  { %742 = vmatpush.msrb.mxu1 %v48_v38 }
 0xe60   :  { %743 = vmatpush.msrb.mxu1 %v47_v39 }
 0xe62   :  { %744 = vmatpush.msrb.mxu1 %v46_v40 }
 0xe64   :  { %745 = vmatpush.msrb.mxu1 %v45_v41 }
 0xeb8   :  { %v609_v42 = vpop.permute.xlu1 %608 }
 0xeb9   :  { %v611_v46 = vmul.f32 %v609_v42, %v603_v43  ;;  %v44_v42 = vld [vmem:[#allocation2 + $0x68] sm:$0xff] }
 0xeba   :  { %746 = vmatpush.msrb.mxu1 %v44_v42 }
 0xebb   :  { %613 = vrot.lane.b32.xlu2 %v611_v46, %s937_s21 }
 0xec0   :  { %v627_v52 = vpop.permute.xlu1 %626 }
 0xec1   :  { %vm628_vm14 = vcmp.eq.s32.totalorder %v627_v52, 1 }
 0xf15   :  { %v614_v49 = vpop.permute.xlu2 %613 }
 0xf16   :  { %v616_v50 = vadd.f32 %v614_v49, %v606_v48 }
 0xf18   :  { %866 = vtanh.f32 %v616_v50  ;;  %v630_v14 = vsel %vm628_vm14, %v616_v50, %v559_v47 }
 0xf1e   :  { %v867_v51 = vpop.eup %866 }
 0xf1f   :  { %619 = vrot.lane.b32.xlu0 %v867_v51, %s936_s20 }
 0xf91   :  { %v620_v53 = vpop.permute.xlu0 %619 }
 0xf92   :  { %v622_v54 = vmul.f32 %v620_v53, %v603_v43  ;;  %v43_v43 = vld [vmem:[#allocation2 + $0x60] sm:$0xff] }
 0xf93   :  { %747 = vmatpush.msrb.mxu1 %v43_v43 }
 0xf94   :  { %v629_v55 = vsel %vm628_vm14, %v622_v54, %v558_v1 }
 0xf95   :  { %632 = vrot.lane.b32.xlu2 %v629_v55, %s937_s21 }
 0xfef   :  { %v633_v56 = vpop.permute.xlu2 %632 }
 0xff0   :  { %794 = vmatmul.msk.f32.vlgmr.msrb.gmra.mxu2 %vm135_vm7, %v633_v56 }
0x1073   :  { %v653_v58 = vpop.f32.mrf.mxu2 }
0x1074   :  { %v656_v59 = vadd.f32 %v653_v58, %v133_v57 }
0x1076   :  { %868 = vtanh.f32 %v656_v59  ;;  %v795_v62 = vmul.f32 -1.442695, %v656_v59 }
0x1078   :  { %870 = vpow2.f32 %v795_v62 }
0x107c   :  { %v869_v60 = vpop.eup %868 }
0x107d   :  { %679 = vrot.lane.b32.xlu0 %v869_v60, %s936_s20 }
0x107e   :  { %v871_v63 = vpop.eup %870 }
0x107f   :  { %v660_v2 = vadd.f32 1.0, %v871_v63 }
0x1081   :  { %872 = vrcp.f32 %v660_v2  ;;  %v672_v9 = vand.u32 2147483648, %v660_v2  ;;  %vm666_vm2 = vweird.f32 %v660_v2  ;;  %v670_v10 = vand.u32 2147483647, %v660_v2 }
0x1083   :  { %v673_v34 = vor.u32 1.1754944e-38, %v672_v9  ;;  %vm671_vm0 = vcmp.eq.f32.partialorder %v670_v10, 8.507059e+37 }
0x1085   :  { %697 = vperm.xlu0 %809, %v695_v61  }
0x1087   :  { %v873_v3 = vpop.eup %872 }
0x1088   :  { %v662_v5 = vmul.f32 %v873_v3, %v660_v2  ;;  %vm667_vm1 = vweird.f32 %v873_v3 }
0x1089   :  { %vm668_vm3 = vmor %vm666_vm2, %vm667_vm1 }
0x108a   :  { %v663_v7 = vsub.f32 1.0, %v662_v5 }
0x108c   :  { %v664_v8 = vmul.f32 %v873_v3, %v663_v7 }
0x108e   :  { %v665_v45 = vadd.f32 %v873_v3, %v664_v8 }
0x1090   :  { %v669_v11 = vsel %vm668_vm3, %v873_v3, %v665_v45 }
0x1091   :  { %v674_v12 = vsel %vm671_vm0, %v673_v34, %v669_v11 }
0x1092   :  { %v677_v15 = vmul.f32 %v674_v12, %v630_v14 }
0x10ef   :  { %v680_v29 = vpop.permute.xlu0 %679 }
0x10f0   :  { %v682_v13 = vmul.f32 %v680_v29, %v674_v12 }
0x10f2   :  { %684 = vrot.lane.b32.xlu1 %v682_v13, %s937_s21 }
0x10f7   :  { %v698_v23 = vpop.permute.xlu0 %697 }
0x10f8   :  { %vm699_vm4 = vcmp.eq.s32.totalorder %v698_v23, 1 }
0x1164   :  { %v685_v16 = vpop.permute.xlu1 %684 }
0x1165   :  { %v687_v17 = vadd.f32 %v685_v16, %v677_v15 }
0x1167   :  { %874 = vtanh.f32 %v687_v17 }
0x116d   :  { %v875_v18 = vpop.eup %874 }
0x116e   :  { %690 = vrot.lane.b32.xlu2 %v875_v18, %s936_s20 }
0x11c8   :  { %v691_v24 = vpop.permute.xlu2 %690 }
0x11c9   :  { %v693_v0 = vmul.f32 %v691_v24, %v674_v12 }
0x11cb   :  { %v700_v1 = vsel %vm699_vm4, %v693_v0, %v629_v55 }
0x11cc   :  { %703 = vrot.lane.b32.xlu1 %v700_v1, %s937_s21 }
0x123e   :  { %v704_v4 = vpop.permute.xlu1 %703 }
0x123f   :  { %796 = vmatmul.msk.f32.vlgmr.msra.gmra.mxu3 %vm135_vm7, %v704_v4 }
0x12c2   :  { %v724_v44 = vpop.f32.mrf.mxu3 }
0x12c3   :  { %v725_v37 = vadd.f32 %v811_v36, %v724_v44 }
0x12c5   :  { %727 = vmax.xlane.f32.xlu2 %v725_v37 }
0x1338   :  { %v728_v46 = vpop.xlane.xlu2 %727 }
0x1339   :  { %v729_v47 = vsub.f32 %v725_v37, %v728_v46 }
0x133b   :  { %v730_v48 = vmul.f32 1.442695, %v729_v47 }
0x133d   :  { %876 = vpow2.f32 %v730_v48 }
0x1343   :  { %v877_v49 = vpop.eup %876 }
0x1344   :  { %748 = vmatmul.f32.vlgmr.msrb.gmra.mxu1 %v877_v49 }
0x13c1   :  { %v749_v50 = vpop.f32.mrf.mxu1 }
0x13c2   :  { %878 = vlog2.f32 %v749_v50 }
0x13c8   :  { %v879_v51 = vpop.eup %878 }
0x13c9   :  { %v753_v52 = vmul.f32 0.6931472, %v879_v51 }
0x13cb   :  { %v754_v53 = vsub.f32 %v729_v47, %v753_v52 }
0x13cd   :  { %755 = vst [vmem:[#allocation5] sm:$0xff] %v754_v53 }
0x13ce   :  { %766 = dma.vmem_to_hbm [thread:$0]  %s762_s10, 128, %s764_s13, [#allocation4]  }
0x13cf   :  { %930 = dma.done.wait [#allocation4], 128  }
0x13d0   :  { %931 = vsyncadd [#allocation4], 4294967168 }
0x13d1   :  { %771 = vsyncpa [#allocation3], 1 }
0x13d2   :  { %772 = vsyncpa [#allocation4], 1 }

</bundles_post_ra>
